<compile_context>
chip_gen: v6e
topology: v6e:2x2x1
jax: 0.10.0
libtpu: 0.0.40
codegen_flags: <defaults>
</compile_context>

<pallas_src>
import jax
import jax.numpy as jnp
from jax import lax
from jax.experimental import pallas as pl
from jax.experimental.pallas import tpu as pltpu

_VMEM_LIMIT_BYTES = 32 * 1024 * 1024   # safe on v5e/v6e (128 MiB) and v7x (64 MiB)
_BUFFER_BUDGET_BYTES = 8 * 1024 * 1024  # per pipeline buffer; 2 buffers < limit


def _make_single_kernel(inv_hw):
    """One grid step = n_blk whole frames; no accumulator, no pl.when."""
    def kernel(x_ref, o_ref):
        # x_ref: (n_blk, C, HW) ; o_ref: (n_blk, 1, C)
        s = jnp.sum(x_ref[...], axis=-1, dtype=jnp.float32)        # (n_blk, C)
        o_ref[...] = (s * inv_hw)[:, None, :].astype(o_ref.dtype)
    return kernel


def _make_chunked_kernel(hw_total, hw_chunk, inv_hw):
    """Spatial axis tiled in 128-multiple chunks; f32 accumulator per frame."""
    ragged = (hw_total % hw_chunk) != 0

    def kernel(x_ref, o_ref, acc_ref):
        # x_ref: (1, C, hw_chunk) ; o_ref: (1, 1, C) ; acc_ref: (1, C) f32
        h = pl.program_id(1)

        @pl.when(h == 0)
        def _():
            acc_ref[...] = jnp.zeros_like(acc_ref)

        x = x_ref[...]
        if ragged:
            # Last chunk extends past HW in HBM: those VMEM lanes are
            # undefined, so select-zero them BEFORE the reduction.
            col = lax.broadcasted_iota(jnp.int32, x.shape, x.ndim - 1)
            limit = hw_total - h * hw_chunk
            x = jnp.where(col < limit, x, jnp.zeros_like(x))

        acc_ref[...] += jnp.sum(x, axis=-1, dtype=jnp.float32)

        @pl.when(h == pl.num_programs(1) - 1)
        def _():
            o_ref[...] = (acc_ref[...] * inv_hw)[:, None, :].astype(o_ref.dtype)

    return kernel


def _pick_n_blk(n_frames, frame_bytes, budget_bytes):
    """Largest divisor of n_frames whose block fits the per-buffer budget."""
    cap = max(1, budget_bytes // max(frame_bytes, 1))
    cap = min(cap, n_frames)
    best = 1
    for d in range(1, n_frames + 1):
        if n_frames % d == 0 and d <= cap:
            best = d
    return best


def avg_pool_neck(x, masks, clip_seg_num=8, hw_chunk=None,
                  budget_bytes=_BUFFER_BUDGET_BYTES):
    """x: (N, C, H, W) with N = B*clip_seg_num (or (N, C)); masks: (B, M, T).

    Returns seg_feature: (B, C, T), matching the PyTorch module with
    need_pool=True, need_pre_cls=False.
    """
    if x.ndim == 2:                               # feature.unsqueeze(-1).unsqueeze(-1)
        x = x[:, :, None, None]
    N, C, H, W = x.shape
    T = clip_seg_num
    assert N % T == 0, f"N={N} must be a multiple of clip_seg_num={T}"
    B = N // T
    HW = H * W
    itemsize = jnp.dtype(x.dtype).itemsize
    inv_hw = 1.0 / HW
    frame_bytes = C * HW * itemsize

    x3 = x.reshape(N, C, HW)                      # contiguous, free reshape

    # Spatial chunk size: full extent when a frame fits the budget, otherwise
    # a 128-multiple chunk sized to the budget.  hw_chunk kwarg overrides
    # (used in tests to force the chunked / ragged paths).
    if hw_chunk is None:
        if frame_bytes <= budget_bytes:
            hw_chunk = HW
        else:
            hw_chunk = max(128, (budget_bytes // (C * itemsize)) // 128 * 128)
    else:
        hw_chunk = HW if hw_chunk >= HW else max(128, (hw_chunk // 128) * 128)

    if hw_chunk >= HW:
        # ---- single-chunk, frame-blocked path (common case) ----
        n_blk = _pick_n_blk(N, frame_bytes, budget_bytes)
        out = pl.pallas_call(
            _make_single_kernel(inv_hw),
            out_shape=jax.ShapeDtypeStruct((N, 1, C), x.dtype),
            grid_spec=pltpu.PrefetchScalarGridSpec(
                num_scalar_prefetch=0,
                grid=(N // n_blk,),
                in_specs=[pl.BlockSpec((n_blk, C, HW), lambda n: (n, 0, 0))],
                out_specs=pl.BlockSpec((n_blk, 1, C), lambda n: (n, 0, 0)),
            ),
            compiler_params=pltpu.CompilerParams(
                dimension_semantics=("parallel",),
                vmem_limit_bytes=_VMEM_LIMIT_BYTES),
        )(x3)
    else:
        # ---- chunked-spatial path (frame bigger than the buffer budget) ----
        num_chunks = pl.cdiv(HW, hw_chunk)
        out = pl.pallas_call(
            _make_chunked_kernel(HW, hw_chunk, inv_hw),
            out_shape=jax.ShapeDtypeStruct((N, 1, C), x.dtype),
            grid_spec=pltpu.PrefetchScalarGridSpec(
                num_scalar_prefetch=0,
                grid=(N, num_chunks),
                in_specs=[pl.BlockSpec((1, C, hw_chunk), lambda n, h: (n, 0, h))],
                out_specs=pl.BlockSpec((1, 1, C), lambda n, h: (n, 0, 0)),
                scratch_shapes=[pltpu.VMEM((1, C), jnp.float32)],
            ),
            compiler_params=pltpu.CompilerParams(
                dimension_semantics=("parallel", "arbitrary"),
                vmem_limit_bytes=_VMEM_LIMIT_BYTES),
        )(x3)

    # Tiny post-kernel layout + mask (O(N*C), ~HW times smaller than input):
    # (N, 1, C) -> (B, T, C) -> (B, C, T), then broadcast masks row 0 over C.
    pooled = out.reshape(B, T, C).transpose(0, 2, 1)
    return pooled * masks[:, 0:1, :]


def _reference(x, masks, clip_seg_num=8):
    # Pure-JAX reference mirroring the PyTorch forward (need_pool path).
    if x.ndim == 2:
        x = x[:, :, None, None]
    pooled = jnp.mean(x, axis=(2, 3))                              # (N, C)
    B = pooled.shape[0] // clip_seg_num
    feat = pooled.reshape(B, clip_seg_num, -1).transpose(0, 2, 1)  # (B, C, T)
    return feat * masks[:, 0:1, :]


if __name__ == "__main__":
    # Small, deterministic example: batch=2, clip_seg_num=8 -> N=16,
    # channels=32, spatial=16x16, masks have M=5 rows (only row 0 is used).
    B, T, C, H, W = 2, 8, 32, 16, 16
    key = jax.random.PRNGKey(0)
    kx, km, kx2, kx3 = jax.random.split(key, 4)
    x = jax.random.normal(kx, (B * T, C, H, W), dtype=jnp.float32)
    masks = (jax.random.uniform(km, (B, 5, T)) > 0.3).astype(jnp.float32)

    ref = _reference(x, masks, clip_seg_num=T)

    # 1) Common path: whole frames per block, no accumulator.
    seg = jax.block_until_ready(avg_pool_neck(x, masks, clip_seg_num=T))
    assert seg.shape == (B, C, T)
    assert jnp.allclose(seg, ref, atol=1e-5, rtol=1e-5)

    # 2) Forced chunked path (HW=256 split into 2 x 128 chunks; accumulator
    #    init / accumulate / finalize).
    seg_chunked = jax.block_until_ready(
        avg_pool_neck(x, masks, clip_seg_num=T, hw_chunk=128))
    assert jnp.allclose(seg_chunked, ref, atol=1e-5, rtol=1e-5)

    # 3) Ragged spatial extent (HW=169, chunks of 128): exercises the
    #    in-kernel iota tail mask instead of a padded HBM copy.
    xr = jax.random.normal(kx2, (B * T, C, 13, 13), dtype=jnp.float32)
    ref_r = _reference(xr, masks, clip_seg_num=T)
    seg_r = jax.block_until_ready(
        avg_pool_neck(xr, masks, clip_seg_num=T, hw_chunk=128))
    assert jnp.allclose(seg_r, ref_r, atol=1e-5, rtol=1e-5)

    # 4) 2-D feature input path (x of shape (N, C)).
    x2 = jax.random.normal(kx3, (B * T, 64), dtype=jnp.float32)
    ref2 = _reference(x2, masks, clip_seg_num=T)
    seg2 = jax.block_until_ready(avg_pool_neck(x2, masks, clip_seg_num=T))
    assert jnp.allclose(seg2, ref2, atol=1e-5, rtol=1e-5)

    print("KERNEL_OK")
</pallas_src>

<mosaic_0001>
module attributes {stable_mosaic.version = 11 : i64} {
  func.func @kernel(%arg0: i32, %arg1: memref<16x32x256xf32, #tpu.memory_space<vmem>>, %arg2: memref<16x1x32xf32, #tpu.memory_space<vmem>>) attributes {dimension_semantics = [#tpu.dimension_semantics<parallel>], iteration_bounds = array<i64: 1>, scalar_prefetch = 0 : i64, scratch_operands = 0 : i64, tpu.core_type = #tpu.core_type<tc>, window_params = [{transform_indices = @transform_0, window_bounds = array<i64: 16, 32, 256>}, {transform_indices = @transform_1, window_bounds = array<i64: 16, 1, 32>}]} {
    %c0 = arith.constant 0 : index
    %c0_0 = arith.constant 0 : index
    %c0_1 = arith.constant 0 : index
    %0 = vector.load %arg1[%c0, %c0_0, %c0_1] : memref<16x32x256xf32, #tpu.memory_space<vmem>>, vector<16x32x256xf32>
    %cst = arith.constant dense<0.000000e+00> : vector<16x32xf32>
    %1 = vector.multi_reduction <add>, %0, %cst [2] : vector<16x32x256xf32> to vector<16x32xf32>
    %cst_2 = arith.constant 3.906250e-03 : f32
    %2 = vector.broadcast %cst_2 : f32 to vector<16x32xf32>
    %3 = arith.mulf %1, %2 : vector<16x32xf32>
    %4 = vector.shape_cast %3 : vector<16x32xf32> to vector<16x1x32xf32>
    %c0_3 = arith.constant 0 : index
    %c0_4 = arith.constant 0 : index
    %c0_5 = arith.constant 0 : index
    %5 = vector.load %arg2[%c0_3, %c0_4, %c0_5] : memref<16x1x32xf32, #tpu.memory_space<vmem>>, vector<16x1x32xf32>
    tpu.vector_store %arg2[%c0_3, %c0_4, %c0_5], %4 {strides = array<i32>} : memref<16x1x32xf32, #tpu.memory_space<vmem>>, vector<16x1x32xf32>,
    return
  }
  func.func @transform_0(%arg0: i32) -> (i32, i32, i32) {
    %c0_i32 = arith.constant 0 : i32
    %c0_i32_0 = arith.constant 0 : i32
    %c0_i32_1 = arith.constant 0 : i32
    return %arg0, %c0_i32, %c0_i32_0 : i32, i32, i32
  }
  func.func @transform_1(%arg0: i32) -> (i32, i32, i32) {
    %c0_i32 = arith.constant 0 : i32
    %c0_i32_0 = arith.constant 0 : i32
    %c0_i32_1 = arith.constant 0 : i32
    return %arg0, %c0_i32, %c0_i32_0 : i32, i32, i32
  }
}

</mosaic_0001>

<bundles_post_ra>
// kernel: tpu_custom_call.1
= control target key start
LH: loop header
LB: loop body
LE: loop exit
PB: predicated region body
PF: predicated region fallthrough
CT: control target
= control target key end

     0   :  { %6 = vsyncpa [#allocation3], 0  ;;  %s1066_s0 = inlined_call_operand.hbm [shape: f32[16,32,256], index: 0, kind: input, shape index: {}]   ;;  %s1067_s1 = inlined_call_operand.hbm [shape: f32[16,1,32], index: 1, kind: output, shape index: {}]  }
   0x1   :  { %7 = vsyncpa [#allocation4], 0  ;;  %s882_s6 = smov [#allocation2]  }
   0x2   :  { %s13_s7 = sshll.u32 %s882_s6, 4  ;;  %s14_s7 = int_to_ptr.vmem [resolvable:$true] %s13_s7 }
   0x3   :  { %s846_s8 = scalar_lea.vmem %s14_s7, 16384  ;;  %p851_p1 = scmp.lt.s32.totalorder %s14_s7, %s14_s7 }
   0x4   :  { %p847_p0 = scmp.ne.s32.totalorder %s14_s7, %s846_s8  ;;  %p852_p2 = scmp.lt.s32.totalorder %s846_s8, %s846_s8 }
   0x6   :  { %p853_p3 = por %p852_p2, %p851_p1 }
   0x8   :  { %p854_p4 = pnand %p853_p3, %p847_p0 }
   0xa   :  { %857 = shalt.err (!%p854_p4)
}
   0xb   :  { %s883_s9 = smov 256   ;;  %s884_s10 = smov 16  }
   0xc   :  { %19 = dma.hbm_to_vmem [thread:$0]  %s1066_s0, 16384, %s14_s7, [#allocation3], %s883_s9, %s883_s9, %s884_s10  }
   0xd   :  { %878 = dma.done.wait [#allocation3], 16384  }
   0xe   :  { %879 = vsyncadd [#allocation3], 4294950912  ;;  %v27_v0 = vld [vmem:[#allocation2 + $0x20] sm:$0xff]  ;;  %v28_v1 = vld [vmem:[#allocation2 + $0x28] sm:$0xff]  ;;  %vm482_vm0 = vcmask 130112   ;;  %vm489_vm1 = vcmask 195712  }
   0xf   :  { %v23_v2 = vld [vmem:[#allocation2] sm:$0xff]  ;;  %v157_v3 = vadd.f32 %v28_v1, %v27_v0  ;;  %v24_v4 = vld [vmem:[#allocation2 + $0x8] sm:$0xff]  ;;  %v29_v5 = vld [vmem:[#allocation2 + $0x30] sm:$0xff]  ;;  %vm496_vm2 = vcmask 261312   ;;  %vm799_vm3 = vcmask 253952   ;;  %s885_s0 = smov [#allocation5]  }
  0x10   :  { %v30_v6 = vld [vmem:[#allocation2 + $0x38] sm:$0xff]  ;;  %v151_v7 = vadd.f32 %v24_v4, %v23_v2  ;;  %v25_v8 = vld [vmem:[#allocation2 + $0x10] sm:$0xff]  ;;  %v31_v14 = vld [vmem:[#allocation2 + $0x40] sm:$0xff]  ;;  %s821_s13 = sshll.u32 %s885_s0, 4  ;;  %s822_s13 = int_to_ptr.vmem [resolvable:$true] %s821_s13 }
  0x11   :  { %v26_v9 = vld [vmem:[#allocation2 + $0x18] sm:$0xff]  ;;  %158 = vadd.xlane.f32.xlu1 %v157_v3  ;;  %v160_v10 = vadd.f32 %v30_v6, %v29_v5  ;;  %v33_v12 = vld [vmem:[#allocation2 + $0x50] sm:$0xff]  ;;  %v32_v15 = vld [vmem:[#allocation2 + $0x48] sm:$0xff]  ;;  %s858_s14 = scalar_lea.vmem %s822_s13, 256  ;;  %p863_p6 = scmp.lt.s32.totalorder %s822_s13, %s822_s13 }
  0x12   :  { %152 = vadd.xlane.f32.xlu0 %v151_v7  ;;  %v154_v11 = vadd.f32 %v26_v9, %v25_v8  ;;  %v34_v13 = vld [vmem:[#allocation2 + $0x58] sm:$0xff]  ;;  %v163_v17 = vadd.f32 %v32_v15, %v31_v14  ;;  %v37_v18 = vld [vmem:[#allocation2 + $0x70] sm:$0xff]  ;;  %v35_v20 = vld [vmem:[#allocation2 + $0x60] sm:$0xff]  ;;  %p859_p5 = scmp.ne.s32.totalorder %s822_s13, %s858_s14  ;;  %p864_p7 = scmp.lt.s32.totalorder %s858_s14, %s858_s14 }
  0x13   :  { %v166_v16 = vadd.f32 %v34_v13, %v33_v12  ;;  %v38_v19 = vld [vmem:[#allocation2 + $0x78] sm:$0xff]  ;;  %v36_v21 = vld [vmem:[#allocation2 + $0x68] sm:$0xff]  ;;  %v41_v24 = vld [vmem:[#allocation2 + $0x90] sm:$0xff] }
  0x14   :  { %v172_v22 = vadd.f32 %v38_v19, %v37_v18  ;;  %v169_v23 = vadd.f32 %v36_v21, %v35_v20  ;;  %v42_v25 = vld [vmem:[#allocation2 + $0x98] sm:$0xff]  ;;  %v39_v26 = vld [vmem:[#allocation2 + $0x80] sm:$0xff]  ;;  %v40_v27 = vld [vmem:[#allocation2 + $0x88] sm:$0xff]  ;;  %p865_p8 = por %p864_p7, %p863_p6 }
  0x15   :  { %161 = vadd.xlane.f32.xlu1 %v160_v10  ;;  %v178_v28 = vadd.f32 %v42_v25, %v41_v24  ;;  %v175_v29 = vadd.f32 %v40_v27, %v39_v26  ;;  %v45_v30 = vld [vmem:[#allocation2 + $0xb0] sm:$0xff]  ;;  %v46_v31 = vld [vmem:[#allocation2 + $0xb8] sm:$0xff]  ;;  %v43_v32 = vld [vmem:[#allocation2 + $0xa0] sm:$0xff] }
  0x16   :  { %155 = vadd.xlane.f32.xlu0 %v154_v11  ;;  %v44_v33 = vld [vmem:[#allocation2 + $0xa8] sm:$0xff]  ;;  %v184_v34 = vadd.f32 %v46_v31, %v45_v30  ;;  %v49_v36 = vld [vmem:[#allocation2 + $0xd0] sm:$0xff]  ;;  %v50_v37 = vld [vmem:[#allocation2 + $0xd8] sm:$0xff]  ;;  %p866_p9 = pnand %p865_p8, %p859_p5 }
  0x17   :  { %v181_v35 = vadd.f32 %v44_v33, %v43_v32  ;;  %v47_v38 = vld [vmem:[#allocation2 + $0xc0] sm:$0xff]  ;;  %v48_v39 = vld [vmem:[#allocation2 + $0xc8] sm:$0xff]  ;;  %v190_v40 = vadd.f32 %v50_v37, %v49_v36  ;;  %v53_v42 = vld [vmem:[#allocation2 + $0xf0] sm:$0xff] }
  0x18   :  { %v187_v41 = vadd.f32 %v48_v39, %v47_v38  ;;  %v54_v43 = vld [vmem:[#allocation2 + $0xf8] sm:$0xff]  ;;  %v51_v44 = vld [vmem:[#allocation2 + $0xe0] sm:$0xff]  ;;  %v52_v45 = vld [vmem:[#allocation2 + $0xe8] sm:$0xff] }
  0x19   :  { %167 = vadd.xlane.f32.xlu1 %v166_v16  ;;  %v196_v46 = vadd.f32 %v54_v43, %v53_v42  ;;  %v193_v47 = vadd.f32 %v52_v45, %v51_v44  ;;  %v57_v48 = vld [vmem:[#allocation2 + $0x110] sm:$0xff]  ;;  %v58_v49 = vld [vmem:[#allocation2 + $0x118] sm:$0xff]  ;;  %v55_v50 = vld [vmem:[#allocation2 + $0x100] sm:$0xff] }
  0x1a   :  { %164 = vadd.xlane.f32.xlu0 %v163_v17  ;;  %v56_v51 = vld [vmem:[#allocation2 + $0x108] sm:$0xff]  ;;  %v202_v52 = vadd.f32 %v58_v49, %v57_v48  ;;  %v61_v54 = vld [vmem:[#allocation2 + $0x130] sm:$0xff]  ;;  %v62_v55 = vld [vmem:[#allocation2 + $0x138] sm:$0xff] }
  0x1b   :  { %v199_v53 = vadd.f32 %v56_v51, %v55_v50  ;;  %v59_v56 = vld [vmem:[#allocation2 + $0x120] sm:$0xff]  ;;  %v60_v57 = vld [vmem:[#allocation2 + $0x128] sm:$0xff]  ;;  %v208_v58 = vadd.f32 %v62_v55, %v61_v54  ;;  %v65_v60 = vld [vmem:[#allocation2 + $0x150] sm:$0xff] }
  0x1c   :  { %v205_v59 = vadd.f32 %v60_v57, %v59_v56  ;;  %v66_v61 = vld [vmem:[#allocation2 + $0x158] sm:$0xff]  ;;  %v63_v62 = vld [vmem:[#allocation2 + $0x140] sm:$0xff]  ;;  %v64_v63 = vld [vmem:[#allocation2 + $0x148] sm:$0xff] }
  0x1d   :  { %173 = vadd.xlane.f32.xlu1 %v172_v22  ;;  %v214_v0 = vadd.f32 %v66_v61, %v65_v60  ;;  %v211_v1 = vadd.f32 %v64_v63, %v63_v62  ;;  %v69_v2 = vld [vmem:[#allocation2 + $0x170] sm:$0xff]  ;;  %v70_v3 = vld [vmem:[#allocation2 + $0x178] sm:$0xff]  ;;  %v67_v4 = vld [vmem:[#allocation2 + $0x160] sm:$0xff] }
  0x1e   :  { %170 = vadd.xlane.f32.xlu0 %v169_v23  ;;  %v68_v5 = vld [vmem:[#allocation2 + $0x168] sm:$0xff]  ;;  %v220_v6 = vadd.f32 %v70_v3, %v69_v2  ;;  %v73_v8 = vld [vmem:[#allocation2 + $0x190] sm:$0xff]  ;;  %v74_v9 = vld [vmem:[#allocation2 + $0x198] sm:$0xff] }
  0x1f   :  { %v217_v7 = vadd.f32 %v68_v5, %v67_v4  ;;  %v71_v10 = vld [vmem:[#allocation2 + $0x180] sm:$0xff]  ;;  %v72_v11 = vld [vmem:[#allocation2 + $0x188] sm:$0xff]  ;;  %v226_v12 = vadd.f32 %v74_v9, %v73_v8  ;;  %v81_v14 = vld [vmem:[#allocation2 + $0x1d0] sm:$0xff] }
  0x20   :  { %v223_v13 = vadd.f32 %v72_v11, %v71_v10  ;;  %v82_v15 = vld [vmem:[#allocation2 + $0x1d8] sm:$0xff]  ;;  %v79_v16 = vld [vmem:[#allocation2 + $0x1c0] sm:$0xff]  ;;  %v80_v17 = vld [vmem:[#allocation2 + $0x1c8] sm:$0xff] }
  0x21   :  { %179 = vadd.xlane.f32.xlu1 %v178_v28  ;;  %v238_v18 = vadd.f32 %v82_v15, %v81_v14  ;;  %v235_v19 = vadd.f32 %v80_v17, %v79_v16  ;;  %v89_v20 = vld [vmem:[#allocation2 + $0x210] sm:$0xff]  ;;  %v90_v21 = vld [vmem:[#allocation2 + $0x218] sm:$0xff]  ;;  %v87_v22 = vld [vmem:[#allocation2 + $0x200] sm:$0xff] }
  0x22   :  { %176 = vadd.xlane.f32.xlu0 %v175_v29  ;;  %v88_v23 = vld [vmem:[#allocation2 + $0x208] sm:$0xff]  ;;  %v250_v24 = vadd.f32 %v90_v21, %v89_v20  ;;  %v97_v26 = vld [vmem:[#allocation2 + $0x250] sm:$0xff]  ;;  %v98_v27 = vld [vmem:[#allocation2 + $0x258] sm:$0xff] }
  0x23   :  { %v247_v25 = vadd.f32 %v88_v23, %v87_v22  ;;  %v95_v28 = vld [vmem:[#allocation2 + $0x240] sm:$0xff]  ;;  %v96_v29 = vld [vmem:[#allocation2 + $0x248] sm:$0xff]  ;;  %v262_v30 = vadd.f32 %v98_v27, %v97_v26  ;;  %v105_v32 = vld [vmem:[#allocation2 + $0x290] sm:$0xff] }
  0x24   :  { %v259_v31 = vadd.f32 %v96_v29, %v95_v28  ;;  %v106_v33 = vld [vmem:[#allocation2 + $0x298] sm:$0xff]  ;;  %v113_v38 = vld [vmem:[#allocation2 + $0x2d0] sm:$0xff]  ;;  %v83_v4 = vld [vmem:[#allocation2 + $0x1e0] sm:$0xff] }
  0x25   :  { %185 = vadd.xlane.f32.xlu1 %v184_v34  ;;  %v103_v34 = vld [vmem:[#allocation2 + $0x280] sm:$0xff]  ;;  %v274_v36 = vadd.f32 %v106_v33, %v105_v32  ;;  %v114_v39 = vld [vmem:[#allocation2 + $0x2d8] sm:$0xff]  ;;  %v121_v44 = vld [vmem:[#allocation2 + $0x310] sm:$0xff] }
  0x26   :  { %182 = vadd.xlane.f32.xlu0 %v181_v35  ;;  %v104_v35 = vld [vmem:[#allocation2 + $0x288] sm:$0xff]  ;;  %v286_v42 = vadd.f32 %v114_v39, %v113_v38  ;;  %v122_v45 = vld [vmem:[#allocation2 + $0x318] sm:$0xff]  ;;  %v129_v50 = vld [vmem:[#allocation2 + $0x350] sm:$0xff] }
  0x27   :  { %v271_v37 = vadd.f32 %v104_v35, %v103_v34  ;;  %v298_v48 = vadd.f32 %v122_v45, %v121_v44  ;;  %v130_v51 = vld [vmem:[#allocation2 + $0x358] sm:$0xff]  ;;  %v137_v56 = vld [vmem:[#allocation2 + $0x390] sm:$0xff]  ;;  %v84_v5 = vld [vmem:[#allocation2 + $0x1e8] sm:$0xff] }
  0x28   :  { %v310_v54 = vadd.f32 %v130_v51, %v129_v50  ;;  %v138_v57 = vld [vmem:[#allocation2 + $0x398] sm:$0xff]  ;;  %v145_v62 = vld [vmem:[#allocation2 + $0x3d0] sm:$0xff]  ;;  %v241_v8 = vadd.f32 %v84_v5, %v83_v4  ;;  %v99_v10 = vld [vmem:[#allocation2 + $0x260] sm:$0xff] }
  0x29   :  { %191 = vadd.xlane.f32.xlu1 %v190_v40  ;;  %v111_v40 = vld [vmem:[#allocation2 + $0x2c0] sm:$0xff]  ;;  %v322_v60 = vadd.f32 %v138_v57, %v137_v56  ;;  %v146_v63 = vld [vmem:[#allocation2 + $0x3d8] sm:$0xff]  ;;  %v100_v11 = vld [vmem:[#allocation2 + $0x268] sm:$0xff] }
  0x2a   :  { %188 = vadd.xlane.f32.xlu0 %v187_v41  ;;  %v112_v41 = vld [vmem:[#allocation2 + $0x2c8] sm:$0xff]  ;;  %v334_v2 = vadd.f32 %v146_v63, %v145_v62  ;;  %v265_v14 = vadd.f32 %v100_v11, %v99_v10  ;;  %v115_v16 = vld [vmem:[#allocation2 + $0x2e0] sm:$0xff]  ;;  %v85_v34 = vld [vmem:[#allocation2 + $0x1f0] sm:$0xff] }
  0x2b   :  { %v283_v43 = vadd.f32 %v112_v41, %v111_v40  ;;  %v116_v17 = vld [vmem:[#allocation2 + $0x2e8] sm:$0xff]  ;;  %v131_v22 = vld [vmem:[#allocation2 + $0x360] sm:$0xff]  ;;  %v86_v35 = vld [vmem:[#allocation2 + $0x1f8] sm:$0xff] }
  0x2c   :  { %v289_v20 = vadd.f32 %v116_v17, %v115_v16  ;;  %v132_v23 = vld [vmem:[#allocation2 + $0x368] sm:$0xff]  ;;  %v147_v28 = vld [vmem:[#allocation2 + $0x3e0] sm:$0xff]  ;;  %v244_v38 = vadd.f32 %v86_v35, %v85_v34  ;;  %v101_v40 = vld [vmem:[#allocation2 + $0x270] sm:$0xff] }
  0x2d   :  { %197 = vadd.xlane.f32.xlu1 %v196_v46  ;;  %v119_v46 = vld [vmem:[#allocation2 + $0x300] sm:$0xff]  ;;  %v313_v26 = vadd.f32 %v132_v23, %v131_v22  ;;  %v148_v29 = vld [vmem:[#allocation2 + $0x3e8] sm:$0xff]  ;;  %v102_v41 = vld [vmem:[#allocation2 + $0x278] sm:$0xff] }
  0x2e   :  { %194 = vadd.xlane.f32.xlu0 %v193_v47  ;;  %v120_v47 = vld [vmem:[#allocation2 + $0x308] sm:$0xff]  ;;  %v337_v32 = vadd.f32 %v148_v29, %v147_v28  ;;  %v268_v44 = vadd.f32 %v102_v41, %v101_v40 }
  0x2f   :  { %v295_v49 = vadd.f32 %v120_v47, %v119_v46  ;;  %v117_v46 = vld [vmem:[#allocation2 + $0x2f0] sm:$0xff]  ;;  %v118_v47 = vld [vmem:[#allocation2 + $0x2f8] sm:$0xff] }
  0x30   :  { %v292_v50 = vadd.f32 %v118_v47, %v117_v46 }
  0x31   :  { %203 = vadd.xlane.f32.xlu1 %v202_v52  ;;  %v127_v52 = vld [vmem:[#allocation2 + $0x340] sm:$0xff] }
  0x32   :  { %200 = vadd.xlane.f32.xlu0 %v199_v53  ;;  %v128_v53 = vld [vmem:[#allocation2 + $0x348] sm:$0xff] }
  0x33   :  { %v307_v55 = vadd.f32 %v128_v53, %v127_v52  ;;  %v133_v52 = vld [vmem:[#allocation2 + $0x370] sm:$0xff]  ;;  %v134_v53 = vld [vmem:[#allocation2 + $0x378] sm:$0xff] }
  0x34   :  { %v316_v56 = vadd.f32 %v134_v53, %v133_v52 }
  0x35   :  { %209 = vadd.xlane.f32.xlu1 %v208_v58  ;;  %v135_v58 = vld [vmem:[#allocation2 + $0x380] sm:$0xff] }
  0x36   :  { %206 = vadd.xlane.f32.xlu0 %v205_v59  ;;  %v136_v59 = vld [vmem:[#allocation2 + $0x388] sm:$0xff] }
  0x37   :  { %v319_v61 = vadd.f32 %v136_v59, %v135_v58  ;;  %v149_v58 = vld [vmem:[#allocation2 + $0x3f0] sm:$0xff]  ;;  %v150_v59 = vld [vmem:[#allocation2 + $0x3f8] sm:$0xff] }
  0x38   :  { %v340_v62 = vadd.f32 %v150_v59, %v149_v58 }
  0x39   :  { %215 = vadd.xlane.f32.xlu1 %v214_v0  ;;  %v143_v0 = vld [vmem:[#allocation2 + $0x3c0] sm:$0xff] }
  0x3a   :  { %212 = vadd.xlane.f32.xlu0 %v211_v1  ;;  %v144_v1 = vld [vmem:[#allocation2 + $0x3c8] sm:$0xff] }
  0x3b   :  { %v331_v3 = vadd.f32 %v144_v1, %v143_v0  ;;  %v471_v0 = vlaneseq }
  0x3d   :  { %221 = vadd.xlane.f32.xlu1 %v220_v6  ;;  %v75_v6 = vld [vmem:[#allocation2 + $0x1a0] sm:$0xff]  ;;  %v472_v1 = vand.u32 127, %v471_v0 }
  0x3e   :  { %218 = vadd.xlane.f32.xlu0 %v217_v7  ;;  %v76_v7 = vld [vmem:[#allocation2 + $0x1a8] sm:$0xff] }
  0x3f   :  { %v229_v9 = vadd.f32 %v76_v7, %v75_v6  ;;  %v477_v4 = vadd.s32 4294967288, %v472_v1  ;;  %v484_v5 = vadd.s32 4294967280, %v472_v1  ;;  %v491_v7 = vadd.s32 4294967272, %v472_v1 }
  0x41   :  { %227 = vadd.xlane.f32.xlu1 %v226_v12  ;;  %v91_v12 = vld [vmem:[#allocation2 + $0x220] sm:$0xff] }
  0x42   :  { %224 = vadd.xlane.f32.xlu0 %v223_v13  ;;  %v92_v13 = vld [vmem:[#allocation2 + $0x228] sm:$0xff] }
  0x43   :  { %v253_v15 = vadd.f32 %v92_v13, %v91_v12 }
  0x45   :  { %239 = vadd.xlane.f32.xlu1 %v238_v18  ;;  %v107_v18 = vld [vmem:[#allocation2 + $0x2a0] sm:$0xff] }
  0x46   :  { %236 = vadd.xlane.f32.xlu0 %v235_v19  ;;  %v108_v19 = vld [vmem:[#allocation2 + $0x2a8] sm:$0xff] }
  0x47   :  { %v277_v21 = vadd.f32 %v108_v19, %v107_v18 }
  0x49   :  { %251 = vadd.xlane.f32.xlu1 %v250_v24  ;;  %v123_v24 = vld [vmem:[#allocation2 + $0x320] sm:$0xff] }
  0x4a   :  { %248 = vadd.xlane.f32.xlu0 %v247_v25  ;;  %v124_v25 = vld [vmem:[#allocation2 + $0x328] sm:$0xff] }
  0x4b   :  { %v301_v27 = vadd.f32 %v124_v25, %v123_v24 }
  0x4d   :  { %263 = vadd.xlane.f32.xlu1 %v262_v30  ;;  %v139_v30 = vld [vmem:[#allocation2 + $0x3a0] sm:$0xff] }
  0x4e   :  { %260 = vadd.xlane.f32.xlu0 %v259_v31  ;;  %v140_v31 = vld [vmem:[#allocation2 + $0x3a8] sm:$0xff] }
  0x4f   :  { %v325_v33 = vadd.f32 %v140_v31, %v139_v30 }
  0x51   :  { %275 = vadd.xlane.f32.xlu1 %v274_v36  ;;  %v77_v36 = vld [vmem:[#allocation2 + $0x1b0] sm:$0xff] }
  0x52   :  { %272 = vadd.xlane.f32.xlu0 %v271_v37  ;;  %v78_v37 = vld [vmem:[#allocation2 + $0x1b8] sm:$0xff] }
  0x53   :  { %v232_v39 = vadd.f32 %v78_v37, %v77_v36 }
  0x55   :  { %287 = vadd.xlane.f32.xlu1 %v286_v42  ;;  %v93_v42 = vld [vmem:[#allocation2 + $0x230] sm:$0xff] }
  0x56   :  { %284 = vadd.xlane.f32.xlu0 %v283_v43  ;;  %v94_v43 = vld [vmem:[#allocation2 + $0x238] sm:$0xff] }
  0x57   :  { %v256_v45 = vadd.f32 %v94_v43, %v93_v42 }
  0x59   :  { %299 = vadd.xlane.f32.xlu1 %v298_v48  ;;  %v109_v48 = vld [vmem:[#allocation2 + $0x2b0] sm:$0xff] }
  0x5a   :  { %296 = vadd.xlane.f32.xlu0 %v295_v49  ;;  %v110_v49 = vld [vmem:[#allocation2 + $0x2b8] sm:$0xff] }
  0x5b   :  { %v280_v51 = vadd.f32 %v110_v49, %v109_v48 }
  0x5d   :  { %311 = vadd.xlane.f32.xlu1 %v310_v54  ;;  %v125_v54 = vld [vmem:[#allocation2 + $0x330] sm:$0xff] }
  0x5e   :  { %308 = vadd.xlane.f32.xlu0 %v307_v55  ;;  %v126_v55 = vld [vmem:[#allocation2 + $0x338] sm:$0xff] }
  0x5f   :  { %v304_v57 = vadd.f32 %v126_v55, %v125_v54 }
  0x61   :  { %323 = vadd.xlane.f32.xlu1 %v322_v60  ;;  %v141_v60 = vld [vmem:[#allocation2 + $0x3b0] sm:$0xff] }
  0x62   :  { %320 = vadd.xlane.f32.xlu0 %v319_v61  ;;  %v142_v61 = vld [vmem:[#allocation2 + $0x3b8] sm:$0xff] }
  0x63   :  { %v328_v63 = vadd.f32 %v142_v61, %v141_v60 }
  0x65   :  { %335 = vadd.xlane.f32.xlu1 %v334_v2  ;;  %v474_v2 = vshrl.u32 %v471_v0, 7 }
  0x66   :  { %332 = vadd.xlane.f32.xlu0 %v331_v3 }
  0x67   :  { %v903_v11 = vsub.s32 %v477_v4, %v474_v2  ;;  %v905_v12 = vsub.s32 %v484_v5, %v474_v2 }
  0x69   :  { %242 = vadd.xlane.f32.xlu1 %v241_v8  ;;  %v901_v8 = vsub.s32 %v472_v1, %v474_v2 }
  0x6a   :  { %230 = vadd.xlane.f32.xlu0 %v229_v9 }
  0x6d   :  { %266 = vadd.xlane.f32.xlu1 %v265_v14 }
  0x6e   :  { %254 = vadd.xlane.f32.xlu0 %v253_v15  ;;  %v907_v15 = vsub.s32 %v491_v7, %v474_v2 }
  0x71   :  { %290 = vadd.xlane.f32.xlu1 %v289_v20 }
  0x72   :  { %278 = vadd.xlane.f32.xlu0 %v277_v21 }
  0x75   :  { %314 = vadd.xlane.f32.xlu1 %v313_v26 }
  0x76   :  { %302 = vadd.xlane.f32.xlu0 %v301_v27 }
  0x79   :  { %338 = vadd.xlane.f32.xlu1 %v337_v32 }
  0x7a   :  { %326 = vadd.xlane.f32.xlu0 %v325_v33 }
  0x7d   :  { %245 = vadd.xlane.f32.xlu1 %v244_v38 }
  0x7e   :  { %233 = vadd.xlane.f32.xlu0 %v232_v39 }
  0x81   :  { %269 = vadd.xlane.f32.xlu1 %v268_v44 }
  0x82   :  { %257 = vadd.xlane.f32.xlu0 %v256_v45 }
  0x85   :  { %293 = vadd.xlane.f32.xlu1 %v292_v50 }
  0x86   :  { %281 = vadd.xlane.f32.xlu0 %v280_v51 }
  0x89   :  { %317 = vadd.xlane.f32.xlu1 %v316_v56 }
  0x8a   :  { %305 = vadd.xlane.f32.xlu0 %v304_v57 }
  0x8d   :  { %341 = vadd.xlane.f32.xlu1 %v340_v62 }
  0x8e   :  { %329 = vadd.xlane.f32.xlu0 %v328_v63 }
  0x9a   :  { %v159_v3 = vpop.xlane.xlu1 %158 }
  0x9b   :  { %v153_v6 = vpop.xlane.xlu0 %152  ;;  %v345_v13 = vmul.f32 0.00390625, %v159_v3 }
  0x9c   :  { %v343_v9 = vmul.f32 0.00390625, %v153_v6 }
  0x9d   :  { %v488_v21 = vrot.slane %v345_v13, %v905_v12 }
  0x9e   :  { %v162_v10 = vpop.xlane.xlu1 %161  ;;  %v476_v18 = vrot.slane %v343_v9, %v901_v8 }
  0x9f   :  { %v156_v14 = vpop.xlane.xlu0 %155  ;;  %v346_v16 = vmul.f32 0.00390625, %v162_v10 }
  0xa0   :  { %v344_v17 = vmul.f32 0.00390625, %v156_v14 }
  0xa1   :  { %v495_v24 = vrot.slane %v346_v16, %v907_v15 }
  0xa2   :  { %v481_v19 = vrot.slane %v344_v17, %v903_v11  ;;  %v168_v20 = vpop.xlane.xlu1 %167 }
  0xa3   :  { %v348_v22 = vmul.f32 0.00390625, %v168_v20  ;;  %v165_v23 = vpop.xlane.xlu0 %164 }
  0xa4   :  { %v483_v25 = vsel %vm482_vm0, %v481_v19, %v476_v18  ;;  %v347_v26 = vmul.f32 0.00390625, %v165_v23 }
  0xa5   :  { %v490_v27 = vsel %vm489_vm1, %v488_v21, %v483_v25  ;;  %v505_v30 = vrot.slane %v348_v22, %v903_v11 }
  0xa6   :  { %v497_v28 = vsel %vm496_vm2, %v495_v24, %v490_v27  ;;  %v174_v29 = vpop.xlane.xlu1 %173  ;;  %v501_v31 = vrot.slane %v347_v26, %v901_v8 }
  0xa7   :  { %800 = vst.msk [vmem:[#allocation5] sm:$0x1] %vm799_vm3, %v497_v28  ;;  %v350_v32 = vmul.f32 0.00390625, %v174_v29  ;;  %v171_v33 = vpop.xlane.xlu0 %170 }
  0xa8   :  { %v349_v34 = vmul.f32 0.00390625, %v171_v33  ;;  %v506_v38 = vsel %vm482_vm0, %v505_v30, %v501_v31 }
  0xa9   :  { %v515_v35 = vrot.slane %v350_v32, %v907_v15 }
  0xaa   :  { %v510_v36 = vrot.slane %v349_v34, %v905_v12  ;;  %v180_v37 = vpop.xlane.xlu1 %179 }
  0xab   :  { %v352_v39 = vmul.f32 0.00390625, %v180_v37  ;;  %v177_v40 = vpop.xlane.xlu0 %176 }
  0xac   :  { %v511_v41 = vsel %vm489_vm1, %v510_v36, %v506_v38  ;;  %v351_v42 = vmul.f32 0.00390625, %v177_v40 }
  0xad   :  { %v516_v43 = vsel %vm496_vm2, %v515_v35, %v511_v41  ;;  %v524_v45 = vrot.slane %v352_v39, %v903_v11 }
  0xae   :  { %801 = vst.msk [vmem:[#allocation5 + $0x1] sm:$0x1] %vm799_vm3, %v516_v43  ;;  %v186_v44 = vpop.xlane.xlu1 %185  ;;  %v520_v46 = vrot.slane %v351_v42, %v901_v8 }
  0xaf   :  { %v354_v47 = vmul.f32 0.00390625, %v186_v44  ;;  %v183_v48 = vpop.xlane.xlu0 %182 }
  0xb0   :  { %v353_v49 = vmul.f32 0.00390625, %v183_v48  ;;  %v525_v53 = vsel %vm482_vm0, %v524_v45, %v520_v46 }
  0xb1   :  { %v534_v50 = vrot.slane %v354_v47, %v907_v15 }
  0xb2   :  { %v529_v51 = vrot.slane %v353_v49, %v905_v12  ;;  %v192_v52 = vpop.xlane.xlu1 %191 }
  0xb3   :  { %v356_v54 = vmul.f32 0.00390625, %v192_v52  ;;  %v189_v55 = vpop.xlane.xlu0 %188 }
  0xb4   :  { %v530_v56 = vsel %vm489_vm1, %v529_v51, %v525_v53  ;;  %v355_v57 = vmul.f32 0.00390625, %v189_v55 }
  0xb5   :  { %v535_v58 = vsel %vm496_vm2, %v534_v50, %v530_v56  ;;  %v543_v60 = vrot.slane %v356_v54, %v903_v11 }
  0xb6   :  { %802 = vst.msk [vmem:[#allocation5 + $0x2] sm:$0x1] %vm799_vm3, %v535_v58  ;;  %v198_v59 = vpop.xlane.xlu1 %197  ;;  %v539_v61 = vrot.slane %v355_v57, %v901_v8 }
  0xb7   :  { %v358_v62 = vmul.f32 0.00390625, %v198_v59  ;;  %v195_v63 = vpop.xlane.xlu0 %194 }
  0xb8   :  { %v357_v0 = vmul.f32 0.00390625, %v195_v63  ;;  %v544_v4 = vsel %vm482_vm0, %v543_v60, %v539_v61 }
  0xb9   :  { %v553_v1 = vrot.slane %v358_v62, %v907_v15 }
  0xba   :  { %v548_v2 = vrot.slane %v357_v0, %v905_v12  ;;  %v204_v3 = vpop.xlane.xlu1 %203 }
  0xbb   :  { %v360_v5 = vmul.f32 0.00390625, %v204_v3  ;;  %v201_v6 = vpop.xlane.xlu0 %200 }
  0xbc   :  { %v549_v7 = vsel %vm489_vm1, %v548_v2, %v544_v4  ;;  %v359_v9 = vmul.f32 0.00390625, %v201_v6 }
  0xbd   :  { %v554_v10 = vsel %vm496_vm2, %v553_v1, %v549_v7  ;;  %v562_v14 = vrot.slane %v360_v5, %v903_v11 }
  0xbe   :  { %803 = vst.msk [vmem:[#allocation5 + $0x3] sm:$0x1] %vm799_vm3, %v554_v10  ;;  %v210_v13 = vpop.xlane.xlu1 %209  ;;  %v558_v16 = vrot.slane %v359_v9, %v901_v8 }
  0xbf   :  { %v362_v17 = vmul.f32 0.00390625, %v210_v13  ;;  %v207_v18 = vpop.xlane.xlu0 %206 }
  0xc0   :  { %v361_v19 = vmul.f32 0.00390625, %v207_v18  ;;  %v563_v23 = vsel %vm482_vm0, %v562_v14, %v558_v16 }
  0xc1   :  { %v572_v20 = vrot.slane %v362_v17, %v907_v15 }
  0xc2   :  { %v567_v21 = vrot.slane %v361_v19, %v905_v12  ;;  %v216_v22 = vpop.xlane.xlu1 %215 }
  0xc3   :  { %v364_v24 = vmul.f32 0.00390625, %v216_v22  ;;  %v213_v25 = vpop.xlane.xlu0 %212 }
  0xc4   :  { %v568_v26 = vsel %vm489_vm1, %v567_v21, %v563_v23  ;;  %v363_v27 = vmul.f32 0.00390625, %v213_v25 }
  0xc5   :  { %v573_v28 = vsel %vm496_vm2, %v572_v20, %v568_v26  ;;  %v581_v30 = vrot.slane %v364_v24, %v903_v11 }
  0xc6   :  { %804 = vst.msk [vmem:[#allocation5 + $0x4] sm:$0x1] %vm799_vm3, %v573_v28  ;;  %v222_v29 = vpop.xlane.xlu1 %221  ;;  %v577_v31 = vrot.slane %v363_v27, %v901_v8 }
  0xc7   :  { %v366_v32 = vmul.f32 0.00390625, %v222_v29  ;;  %v219_v33 = vpop.xlane.xlu0 %218 }
  0xc8   :  { %v365_v34 = vmul.f32 0.00390625, %v219_v33  ;;  %v582_v38 = vsel %vm482_vm0, %v581_v30, %v577_v31 }
  0xc9   :  { %v591_v35 = vrot.slane %v366_v32, %v907_v15 }
  0xca   :  { %v586_v36 = vrot.slane %v365_v34, %v905_v12  ;;  %v228_v37 = vpop.xlane.xlu1 %227 }
  0xcb   :  { %v225_v39 = vpop.xlane.xlu0 %224  ;;  %v368_v2 = vmul.f32 0.00390625, %v228_v37 }
  0xcc   :  { %v587_v40 = vsel %vm489_vm1, %v586_v36, %v582_v38  ;;  %v367_v3 = vmul.f32 0.00390625, %v225_v39 }
  0xcd   :  { %v592_v41 = vsel %vm496_vm2, %v591_v35, %v587_v40  ;;  %v600_v18 = vrot.slane %v368_v2, %v903_v11 }
  0xce   :  { %805 = vst.msk [vmem:[#allocation5 + $0x5] sm:$0x1] %vm799_vm3, %v592_v41  ;;  %v240_v42 = vpop.xlane.xlu1 %239  ;;  %v596_v21 = vrot.slane %v367_v3, %v901_v8 }
  0xcf   :  { %v237_v43 = vpop.xlane.xlu0 %236  ;;  %v372_v4 = vmul.f32 0.00390625, %v240_v42 }
  0xd0   :  { %v371_v5 = vmul.f32 0.00390625, %v237_v43  ;;  %v601_v36 = vsel %vm482_vm0, %v600_v18, %v596_v21 }
  0xd1   :  { %v619_v22 = vrot.slane %v372_v4, %v903_v11 }
  0xd2   :  { %v252_v44 = vpop.xlane.xlu1 %251  ;;  %v615_v23 = vrot.slane %v371_v5, %v901_v8 }
  0xd3   :  { %v249_v45 = vpop.xlane.xlu0 %248  ;;  %v376_v6 = vmul.f32 0.00390625, %v252_v44 }
  0xd4   :  { %v375_v7 = vmul.f32 0.00390625, %v249_v45  ;;  %v620_v37 = vsel %vm482_vm0, %v619_v22, %v615_v23 }
  0xd5   :  { %v638_v24 = vrot.slane %v376_v6, %v903_v11 }
  0xd6   :  { %v264_v46 = vpop.xlane.xlu1 %263  ;;  %v634_v25 = vrot.slane %v375_v7, %v901_v8 }
  0xd7   :  { %v261_v47 = vpop.xlane.xlu0 %260  ;;  %v380_v9 = vmul.f32 0.00390625, %v264_v46 }
  0xd8   :  { %v379_v10 = vmul.f32 0.00390625, %v261_v47  ;;  %v639_v38 = vsel %vm482_vm0, %v638_v24, %v634_v25 }
  0xd9   :  { %v657_v26 = vrot.slane %v380_v9, %v903_v11 }
  0xda   :  { %v276_v48 = vpop.xlane.xlu1 %275  ;;  %v653_v27 = vrot.slane %v379_v10, %v901_v8 }
  0xdb   :  { %v273_v49 = vpop.xlane.xlu0 %272  ;;  %v384_v14 = vmul.f32 0.00390625, %v276_v48 }
  0xdc   :  { %v383_v16 = vmul.f32 0.00390625, %v273_v49  ;;  %v658_v39 = vsel %vm482_vm0, %v657_v26, %v653_v27 }
  0xdd   :  { %v676_v30 = vrot.slane %v384_v14, %v903_v11 }
  0xde   :  { %v288_v50 = vpop.xlane.xlu1 %287  ;;  %v672_v31 = vrot.slane %v383_v16, %v901_v8 }
  0xdf   :  { %v285_v51 = vpop.xlane.xlu0 %284  ;;  %v388_v19 = vmul.f32 0.00390625, %v288_v50 }
  0xe0   :  { %v387_v20 = vmul.f32 0.00390625, %v285_v51  ;;  %v677_v43 = vsel %vm482_vm0, %v676_v30, %v672_v31 }
  0xe1   :  { %v695_v34 = vrot.slane %v388_v19, %v903_v11 }
  0xe2   :  { %v300_v52 = vpop.xlane.xlu1 %299  ;;  %v691_v35 = vrot.slane %v387_v20, %v901_v8 }
  0xe3   :  { %v297_v53 = vpop.xlane.xlu0 %296  ;;  %v392_v49 = vmul.f32 0.00390625, %v300_v52 }
  0xe4   :  { %v696_v48 = vsel %vm482_vm0, %v695_v34, %v691_v35  ;;  %v391_v50 = vmul.f32 0.00390625, %v297_v53 }
  0xe6   :  { %v312_v54 = vpop.xlane.xlu1 %311 }
  0xe7   :  { %v309_v55 = vpop.xlane.xlu0 %308 }
  0xea   :  { %v957_v56 = vpop.xlane.xlu1 %323 }
  0xeb   :  { %v959_v57 = vpop.xlane.xlu0 %320  ;;  %v400_v31 = vmul.f32 0.00390625, %v957_v56 }
  0xee   :  { %v961_v58 = vpop.xlane.xlu1 %335 }
  0xef   :  { %v963_v59 = vpop.xlane.xlu0 %332  ;;  %v404_v35 = vmul.f32 0.00390625, %v961_v58 }
  0xf2   :  { %v243_v60 = vpop.xlane.xlu1 %242 }
  0xf3   :  { %v231_v61 = vpop.xlane.xlu0 %230  ;;  %v373_v28 = vmul.f32 0.00390625, %v243_v60  ;;  %v396_v60 = vmul.f32 0.00390625, %v312_v54 }
  0xf4   :  { %v369_v32 = vmul.f32 0.00390625, %v231_v61  ;;  %v395_v61 = vmul.f32 0.00390625, %v309_v55  ;;  %v714_v55 = vrot.slane %v392_v49, %v903_v11 }
  0xf5   :  { %v624_v40 = vrot.slane %v373_v28, %v905_v12  ;;  %v733_v14 = vrot.slane %v396_v60, %v903_v11 }
  0xf6   :  { %v267_v62 = vpop.xlane.xlu1 %266  ;;  %v605_v44 = vrot.slane %v369_v32, %v905_v12  ;;  %v729_v16 = vrot.slane %v395_v61, %v901_v8  ;;  %v399_v32 = vmul.f32 0.00390625, %v959_v57 }
  0xf7   :  { %v255_v63 = vpop.xlane.xlu0 %254  ;;  %v381_v41 = vmul.f32 0.00390625, %v267_v62  ;;  %v625_v62 = vsel %vm489_vm1, %v624_v40, %v620_v37 }
  0xf8   :  { %v377_v45 = vmul.f32 0.00390625, %v255_v63  ;;  %v606_v7 = vsel %vm489_vm1, %v605_v44, %v601_v36  ;;  %v403_v36 = vmul.f32 0.00390625, %v963_v59 }
  0xf9   :  { %v662_v4 = vrot.slane %v381_v41, %v905_v12 }
  0xfa   :  { %v291_v0 = vpop.xlane.xlu1 %290  ;;  %v643_v9 = vrot.slane %v377_v45, %v905_v12  ;;  %v767_v49 = vrot.slane %v403_v36, %v901_v8 }
  0xfb   :  { %v279_v1 = vpop.xlane.xlu0 %278  ;;  %v389_v2 = vmul.f32 0.00390625, %v291_v0  ;;  %v710_v0 = vrot.slane %v391_v50, %v901_v8  ;;  %v663_v20 = vsel %vm489_vm1, %v662_v4, %v658_v39  ;;  %v748_v50 = vrot.slane %v399_v32, %v901_v8 }
  0xfc   :  { %v385_v5 = vmul.f32 0.00390625, %v279_v1  ;;  %v644_v25 = vsel %vm489_vm1, %v643_v9, %v639_v38 }
  0xfd   :  { %v700_v18 = vrot.slane %v389_v2, %v905_v12  ;;  %v715_v45 = vsel %vm482_vm0, %v714_v55, %v710_v0 }
  0xfe   :  { %v965_v13 = vpop.xlane.xlu1 %314  ;;  %v681_v21 = vrot.slane %v385_v5, %v905_v12 }
  0xff   :  { %v967_v17 = vpop.xlane.xlu0 %302  ;;  %v397_v22 = vmul.f32 0.00390625, %v965_v13  ;;  %v701_v37 = vsel %vm489_vm1, %v700_v18, %v696_v48  ;;  %v771_v48 = vrot.slane %v404_v35, %v903_v11 }
 0x100   :  { %v393_v26 = vmul.f32 0.00390625, %v967_v17  ;;  %v682_v38 = vsel %vm489_vm1, %v681_v21, %v677_v43 }
 0x101   :  { %v738_v56 = vrot.slane %v397_v22, %v905_v12 }
 0x102   :  { %v977_v29 = vpop.xlane.xlu1 %338  ;;  %v719_v41 = vrot.slane %v393_v26, %v905_v12 }
 0x103   :  { %v981_v33 = vpop.xlane.xlu0 %326  ;;  %v405_v57 = vmul.f32 0.00390625, %v977_v29 }
 0x104   :  { %v401_v58 = vmul.f32 0.00390625, %v981_v33 }
 0x105   :  { %v776_v60 = vrot.slane %v405_v57, %v905_v12 }
 0x106   :  { %v246_v42 = vpop.xlane.xlu1 %245 }
 0x107   :  { %v374_v46 = vmul.f32 0.00390625, %v246_v42  ;;  %v234_v47 = vpop.xlane.xlu0 %233 }
 0x108   :  { %v370_v51 = vmul.f32 0.00390625, %v234_v47  ;;  %v752_v47 = vrot.slane %v400_v31, %v903_v11 }
 0x109   :  { %v629_v3 = vrot.slane %v374_v46, %v907_v15  ;;  %v734_v46 = vsel %vm482_vm0, %v733_v14, %v729_v16 }
 0x10a   :  { %v610_v6 = vrot.slane %v370_v51, %v907_v15  ;;  %v270_v63 = vpop.xlane.xlu1 %269  ;;  %v739_v51 = vsel %vm489_vm1, %v738_v56, %v734_v46  ;;  %v753_v9 = vsel %vm482_vm0, %v752_v47, %v748_v50 }
 0x10b   :  { %v630_v52 = vsel %vm496_vm2, %v629_v3, %v625_v62  ;;  %v382_v53 = vmul.f32 0.00390625, %v270_v63  ;;  %v258_v54 = vpop.xlane.xlu0 %257  ;;  %v720_v3 = vsel %vm489_vm1, %v719_v41, %v715_v45  ;;  %v757_v62 = vrot.slane %v401_v58, %v905_v12 }
 0x10c   :  { %807 = vst.msk [vmem:[#allocation5 + $0x7] sm:$0x1] %vm799_vm3, %v630_v52  ;;  %v611_v10 = vsel %vm496_vm2, %v610_v6, %v606_v7  ;;  %v378_v1 = vmul.f32 0.00390625, %v258_v54  ;;  %v772_v63 = vsel %vm482_vm0, %v771_v48, %v767_v49 }
 0x10d   :  { %806 = vst.msk [vmem:[#allocation5 + $0x6] sm:$0x1] %vm799_vm3, %v611_v10  ;;  %v667_v19 = vrot.slane %v382_v53, %v907_v15  ;;  %v777_v12 = vsel %vm489_vm1, %v776_v60, %v772_v63  ;;  %v758_v53 = vsel %vm489_vm1, %v757_v62, %v753_v9 }
 0x10e   :  { %v648_v23 = vrot.slane %v378_v1, %v907_v15  ;;  %v294_v24 = vpop.xlane.xlu1 %293 }
 0x10f   :  { %v668_v27 = vsel %vm496_vm2, %v667_v19, %v663_v20  ;;  %v390_v28 = vmul.f32 0.00390625, %v294_v24  ;;  %v282_v30 = vpop.xlane.xlu0 %281 }
 0x110   :  { %809 = vst.msk [vmem:[#allocation5 + $0x9] sm:$0x1] %vm799_vm3, %v668_v27  ;;  %v649_v34 = vsel %vm496_vm2, %v648_v23, %v644_v25  ;;  %v386_v13 = vmul.f32 0.00390625, %v282_v30 }
 0x111   :  { %808 = vst.msk [vmem:[#allocation5 + $0x8] sm:$0x1] %vm799_vm3, %v649_v34  ;;  %v705_v17 = vrot.slane %v390_v28, %v907_v15 }
 0x112   :  { %v686_v39 = vrot.slane %v386_v13, %v907_v15  ;;  %v318_v40 = vpop.xlane.xlu1 %317 }
 0x113   :  { %v706_v59 = vsel %vm496_vm2, %v705_v17, %v701_v37  ;;  %v398_v42 = vmul.f32 0.00390625, %v318_v40  ;;  %v306_v44 = vpop.xlane.xlu0 %305 }
 0x114   :  { %811 = vst.msk [vmem:[#allocation5 + $0xb] sm:$0x1] %vm799_vm3, %v706_v59  ;;  %v687_v43 = vsel %vm496_vm2, %v686_v39, %v682_v38  ;;  %v394_v29 = vmul.f32 0.00390625, %v306_v44 }
 0x115   :  { %810 = vst.msk [vmem:[#allocation5 + $0xa] sm:$0x1] %vm799_vm3, %v687_v43  ;;  %v743_v33 = vrot.slane %v398_v42, %v907_v15 }
 0x116   :  { %v724_v61 = vrot.slane %v394_v29, %v907_v15  ;;  %v342_v2 = vpop.xlane.xlu1 %341 }
 0x117   :  { %v744_v11 = vsel %vm496_vm2, %v743_v33, %v739_v51  ;;  %v406_v4 = vmul.f32 0.00390625, %v342_v2  ;;  %v330_v5 = vpop.xlane.xlu0 %329 }
 0x118   :  { %813 = vst.msk [vmem:[#allocation5 + $0xd] sm:$0x1] %vm799_vm3, %v744_v11  ;;  %v725_v6 = vsel %vm496_vm2, %v724_v61, %v720_v3  ;;  %v402_v8 = vmul.f32 0.00390625, %v330_v5 }
 0x119   :  { %812 = vst.msk [vmem:[#allocation5 + $0xc] sm:$0x1] %vm799_vm3, %v725_v6  ;;  %v781_v7 = vrot.slane %v406_v4, %v907_v15 }
 0x11a   :  { %v762_v52 = vrot.slane %v402_v8, %v907_v15 }
 0x11b   :  { %v782_v54 = vsel %vm496_vm2, %v781_v7, %v777_v12 }
 0x11c   :  { %815 = vst.msk [vmem:[#allocation5 + $0xf] sm:$0x1] %vm799_vm3, %v782_v54  ;;  %v763_v55 = vsel %vm496_vm2, %v762_v52, %v758_v53 }
 0x11d   :  { %814 = vst.msk [vmem:[#allocation5 + $0xe] sm:$0x1] %vm799_vm3, %v763_v55 }
 0x11e   :  { %869 = shalt.err (!%p866_p9)
}
 0x11f   :  { %s886_s15 = smov 1  }
 0x120   :  { %827 = dma.vmem_to_hbm [thread:$0]  %s822_s13, 256, %s1067_s1, [#allocation4], %s884_s10, %s884_s10, %s886_s15  }
 0x121   :  { %880 = dma.done.wait [#allocation4], 256  }
 0x122   :  { %881 = vsyncadd [#allocation4], 4294967040 }
 0x123   :  { %831 = vsyncpa [#allocation3], 1 }
 0x124   :  { %832 = vsyncpa [#allocation4], 1 }

</bundles_post_ra>
